<compile_context>
chip_gen: v7x
topology: tpu7x:2x2x1
jax: 0.10.0
libtpu: 0.0.40
codegen_flags: <defaults>
</compile_context>

<pallas_src>
import functools

import jax
import jax.numpy as jnp
from jax import lax
from jax.experimental import pallas as pl
from jax.experimental.pallas import tpu as pltpu

_EPS = 1e-8

# Double-buffered VMEM budget for the pairwise pass (safe on v5e/v6e 128 MiB and v7x 64 MiB).
_PAIRWISE_VMEM_BUDGET = 40 * 1024 * 1024
_VMEM_LIMIT_CAP = 60 * 1024 * 1024


def _apply_method(score, method):
    """In-kernel equivalent of _post_process for the element-wise methods."""
    if method == 'sigmoid':
        return jax.nn.sigmoid(score)
    elif method == 'exp':
        return jnp.exp(jnp.minimum(score, 70.0))
    assert method == 'origin'
    return score


def _mosaic_params(semantics, ws_bytes=None):
    kwargs = dict(dimension_semantics=semantics)
    if ws_bytes is not None:
        limit = int(ws_bytes * 1.25) + (2 << 20)
        kwargs["vmem_limit_bytes"] = int(min(max(limit, 32 << 20), _VMEM_LIMIT_CAP))
    return pltpu.CompilerParams(**kwargs)


def _pick_row_tile(R, bytes_per_row, target_bytes=2 << 20, max_rows=2048):
    """Adaptive row tile: ~2 MiB per block (memory-bound passes), multiple of 128 or full R."""
    if R <= 128:
        return R
    tr = target_bytes // max(int(bytes_per_row), 1)
    tr = max(128, min(max_rows, tr))
    tr = (tr // 128) * 128
    if tr >= R:
        return R
    return int(tr)


def _select_pairwise_tiles(M, N, D, in_itemsize):
    """Largest square-ish tiles (<=1024) whose double-buffered working set fits the budget."""
    def ws(tm, tn):
        return 2 * (tm + tn) * D * in_itemsize + 2 * tm * tn * 4  # 2x inputs + 2x f32 out
    for cap in (1024, 512, 256, 128):
        tm = M if M <= cap else cap
        tn = N if N <= cap else cap
        if ws(tm, tn) <= _PAIRWISE_VMEM_BUDGET:
            return tm, tn, ws(tm, tn)
    tm = M if M <= 128 else 128
    tn = N if N <= 128 else 128
    return tm, tn, ws(tm, tn)


# ---------------- Pass 1: (project +) L2-normalize rows (optionally transposed out) -------

def _normalize_kernel(x_ref, o_ref, *, transpose_out):
    x = x_ref[...].astype(jnp.float32)
    ssq = jnp.sum(x * x, axis=-1, keepdims=True)
    y = x * lax.rsqrt(jnp.maximum(ssq, _EPS * _EPS))   # == x / max(||x||, eps)
    if transpose_out:
        y = jnp.transpose(y)                           # once per k row tile (XLU), not per (i,j)
    o_ref[...] = y.astype(o_ref.dtype)


def _project_normalize_kernel(x_ref, wt_ref, o_ref, *, transpose_out):
    wt = wt_ref[...]                                   # W.T, already in the MXU dtype (bf16)
    xp = jnp.dot(x_ref[...].astype(wt.dtype), wt, preferred_element_type=jnp.float32)
    ssq = jnp.sum(xp * xp, axis=-1, keepdims=True)
    y = xp * lax.rsqrt(jnp.maximum(ssq, _EPS * _EPS))
    if transpose_out:
        y = jnp.transpose(y)
    o_ref[...] = y.astype(o_ref.dtype)


def _normalize_rows(x, w_t, out_dtype, *, transpose_out=False):
    R, d_in = x.shape
    d_out = d_in if w_t is None else w_t.shape[1]
    x_bytes = x.dtype.itemsize
    out_bytes = jnp.dtype(out_dtype).itemsize
    tr = _pick_row_tile(R, d_in * x_bytes)
    grid = (pl.cdiv(R, tr),)

    if transpose_out:
        out_shape = jax.ShapeDtypeStruct((d_out, R), out_dtype)
        out_spec = pl.BlockSpec((d_out, tr), lambda i: (0, i))
    else:
        out_shape = jax.ShapeDtypeStruct((R, d_out), out_dtype)
        out_spec = pl.BlockSpec((tr, d_out), lambda i: (i, 0))

    in_specs = [pl.BlockSpec((tr, d_in), lambda i: (i, 0))]
    ws = 2 * tr * d_in * x_bytes + 2 * tr * d_out * out_bytes
    if w_t is None:
        kernel = functools.partial(_normalize_kernel, transpose_out=transpose_out)
        args = (x,)
    else:
        kernel = functools.partial(_project_normalize_kernel, transpose_out=transpose_out)
        # W.T is loop-invariant (same block index every step) -> DMA'd once, kept resident.
        in_specs.append(pl.BlockSpec((d_in, d_out), lambda i: (0, 0)))
        ws += 2 * d_in * d_out * w_t.dtype.itemsize
        args = (x, w_t)

    return pl.pallas_call(
        kernel,
        grid=grid,
        in_specs=in_specs,
        out_specs=out_spec,
        out_shape=out_shape,
        compiler_params=_mosaic_params(("parallel",), ws),
    )(*args)


# ---------------- Pass 2: tiled pairwise matmul of normalized rows ----------------

def _pairwise_kernel(qn_ref, knt_ref, o_ref, *, method):
    # qn tile: [tm, D]; knt tile: [D, tn] (k was pre-transposed in pass 1) -> pure MXU matmul.
    s = jnp.dot(qn_ref[...], knt_ref[...], preferred_element_type=jnp.float32)
    o_ref[...] = _apply_method(s, method).astype(o_ref.dtype)


def _pairwise(qn, kn_t, method):
    M, D = qn.shape
    _, N = kn_t.shape
    in_itemsize = qn.dtype.itemsize
    tm, tn, ws = _select_pairwise_tiles(M, N, D, in_itemsize)
    grid = (pl.cdiv(M, tm), pl.cdiv(N, tn))

    cost = pl.CostEstimate(
        flops=2 * M * N * D,
        transcendentals=(M * N if method in ('sigmoid', 'exp') else 0),
        bytes_accessed=(M * D * in_itemsize                 # q read once per i
                        + grid[0] * N * D * in_itemsize     # k re-read per q row-block
                        + M * N * 4),
    )

    return pl.pallas_call(
        functools.partial(_pairwise_kernel, method=method),
        grid=grid,
        in_specs=[
            pl.BlockSpec((tm, D), lambda i, j: (i, 0)),   # q tile revisited across j
            pl.BlockSpec((D, tn), lambda i, j: (0, j)),
        ],
        out_specs=pl.BlockSpec((tm, tn), lambda i, j: (i, j)),
        out_shape=jax.ShapeDtypeStruct((M, N), jnp.float32),
        compiler_params=_mosaic_params(("parallel", "parallel"), ws),
        cost_estimate=cost,
    )(qn, kn_t)


# ---------------- Flatten path: row-wise cosine similarity (projection fused) -------------

def _flatten_body(q, k, o_ref, method):
    qq = jnp.sum(q * q, axis=-1, keepdims=True)
    kk = jnp.sum(k * k, axis=-1, keepdims=True)
    num = jnp.sum(q * k, axis=-1, keepdims=True)
    # torch F.cosine_similarity clamps the PRODUCT of squared norms at eps^2.
    score = num * lax.rsqrt(jnp.maximum(qq * kk, _EPS * _EPS))
    o_ref[...] = _apply_method(score, method)


def _flatten_kernel(q_ref, k_ref, o_ref, *, method):
    _flatten_body(q_ref[...].astype(jnp.float32), k_ref[...].astype(jnp.float32),
                  o_ref, method)


def _flatten_proj_kernel(q_ref, k_ref, wt_ref, o_ref, *, method):
    # Projection fused in: no (R, d_k) f32 intermediate round-trips through HBM.
    wt = wt_ref[...]
    q = jnp.dot(q_ref[...].astype(wt.dtype), wt, preferred_element_type=jnp.float32)
    k = jnp.dot(k_ref[...].astype(wt.dtype), wt, preferred_element_type=jnp.float32)
    _flatten_body(q, k, o_ref, method)


def _flatten(q, k, w_t, method):
    M, d_in = q.shape
    x_bytes = q.dtype.itemsize
    bytes_per_row = 2 * d_in * x_bytes
    if w_t is not None:
        bytes_per_row += 2 * w_t.shape[1] * 4
    tr = _pick_row_tile(M, bytes_per_row)
    grid = (pl.cdiv(M, tr),)

    in_specs = [pl.BlockSpec((tr, d_in), lambda i: (i, 0)),
                pl.BlockSpec((tr, d_in), lambda i: (i, 0))]
    ws = 4 * tr * d_in * x_bytes + 2 * tr * 4
    if w_t is None:
        kernel = functools.partial(_flatten_kernel, method=method)
        args = (q, k)
    else:
        kernel = functools.partial(_flatten_proj_kernel, method=method)
        in_specs.append(pl.BlockSpec(w_t.shape, lambda i: (0, 0)))
        ws += 2 * w_t.size * w_t.dtype.itemsize
        args = (q, k, w_t)

    out = pl.pallas_call(
        kernel,
        grid=grid,
        in_specs=in_specs,
        out_specs=pl.BlockSpec((tr, 1), lambda i: (i, 0)),
        out_shape=jax.ShapeDtypeStruct((M, 1), jnp.float32),
        compiler_params=_mosaic_params(("parallel",), ws),
    )(*args)
    return out.reshape((M,))


# ---------------- Module wrapper ----------------

class CosSim:
    """JAX/Pallas port of core.sim_metric.CosSim.

    matmul_dtype: dtype of the projection weight and of the normalized intermediates fed to
                  the pairwise MXU matmul.  bf16 (default) uses the native bf16 MXU path on
                  v5e/v6e/v7x with f32 accumulation and f32 norms (scores differ from an f32
                  reference at ~1e-2).  Pass jnp.float32 for bit-accurate f32 behavior.
    """

    def __init__(self, d_in: int = -1, d_k: int = -1, paramize: bool = False, *,
                 key=None, matmul_dtype=jnp.bfloat16):
        self.paramize = paramize
        self.matmul_dtype = matmul_dtype
        self.w = None
        self.w_t = None
        if self.paramize:
            assert d_in > 0 and d_k > 0
            if key is None:
                key = jax.random.PRNGKey(0)
            # glorot(uniform) init of nn.Linear(d_in, d_k, bias=False).weight, shape [d_k, d_in]
            bound = (6.0 / (d_in + d_k)) ** 0.5
            self.w = jax.random.uniform(key, (d_k, d_in), jnp.float32, -bound, bound)
            wt_dtype = matmul_dtype if matmul_dtype is not None else jnp.float32
            # Pre-transpose once and pre-cast to the MXU dtype (no per-tile .T / f32 MXU path).
            self.w_t = jnp.transpose(self.w).astype(wt_dtype)   # [d_in, d_k]

    def __call__(self, q, k, flatten: bool = False, method: str = 'origin'):
        assert method in ('origin', 'sigmoid', 'exp'), \
            "TODO(synk): 'softmax' post-processing not implemented"
        q = jnp.asarray(q)
        k = jnp.asarray(k)

        if flatten:
            assert q.shape == k.shape, "flatten=True requires matching q/k shapes"
            return _flatten(q, k, self.w_t, method)

        # Pairwise: projection/normalization hoisted out of the (i, j) tile loop; the k side
        # is emitted pre-transposed so pass 2 is a plain [tm,D] x [D,tn] MXU matmul.
        mm_dt = self.matmul_dtype if self.matmul_dtype is not None else q.dtype
        qn = _normalize_rows(q, self.w_t, mm_dt)
        kn_t = _normalize_rows(k, self.w_t, mm_dt, transpose_out=True)
        return _pairwise(qn, kn_t, method)


# ---------------- Reference (plain JAX, f32) for sanity check ----------------

def _ref_pairwise(q, k, w=None):
    if w is not None:
        q, k = q @ w.T, k @ w.T
    qn = q / jnp.maximum(jnp.linalg.norm(q, axis=-1, keepdims=True), _EPS)
    kn = k / jnp.maximum(jnp.linalg.norm(k, axis=-1, keepdims=True), _EPS)
    return qn @ kn.T


def _ref_flatten(q, k, w=None):
    if w is not None:
        q, k = q @ w.T, k @ w.T
    denom = jnp.maximum(jnp.linalg.norm(q, axis=-1) * jnp.linalg.norm(k, axis=-1), _EPS)
    return jnp.sum(q * k, axis=-1) / denom


if __name__ == "__main__":
    key = jax.random.PRNGKey(0)
    kq, kk, kw, kq2, kk2, kk3 = jax.random.split(key, 6)

    # ---- small shapes ----
    M, N, D_IN, D_K = 16, 24, 32, 16
    q = jax.random.normal(kq, (M, D_IN), jnp.float32)
    k = jax.random.normal(kk, (N, D_IN), jnp.float32)

    # 1) paramize=True, pairwise, 'origin', f32 intermediates -> tight tolerance
    mod_p = CosSim(d_in=D_IN, d_k=D_K, paramize=True, key=kw, matmul_dtype=jnp.float32)
    out = jax.block_until_ready(mod_p(q, k, flatten=False, method='origin'))
    ref = _ref_pairwise(q, k, mod_p.w)
    assert out.shape == (M, N)
    assert jnp.allclose(out, ref, atol=1e-5, rtol=1e-5)

    # 2) paramize=False, pairwise, 'sigmoid', default bf16 MXU path -> loose tolerance
    mod_bf16 = CosSim()
    out = jax.block_until_ready(mod_bf16(q, k, flatten=False, method='sigmoid'))
    ref = jax.nn.sigmoid(_ref_pairwise(q, k))
    assert out.shape == (M, N)
    assert jnp.allclose(out, ref, atol=2e-2)

    # 3) paramize=False, flatten, 'sigmoid' (matching q/k shapes) -> tight tolerance
    out = jax.block_until_ready(mod_bf16(q, k[:M], flatten=True, method='sigmoid'))
    ref = jax.nn.sigmoid(_ref_flatten(q, k[:M]))
    assert out.shape == (M,)
    assert jnp.allclose(out, ref, atol=1e-5, rtol=1e-5)

    # 4) paramize=True, flatten, 'origin' (projection fused into the flatten kernel)
    mod_pf = CosSim(d_in=D_IN, d_k=D_K, paramize=True, key=kw, matmul_dtype=jnp.float32)
    out = jax.block_until_ready(mod_pf(q, k[:M], flatten=True, method='origin'))
    ref = _ref_flatten(q, k[:M], mod_pf.w)
    assert out.shape == (M,)
    assert jnp.allclose(out, ref, atol=1e-5, rtol=1e-5)

    # ---- moderate shapes exercising non-trivial tiles / full-block edge handling ----
    M2, N2, D2 = 300, 270, 64
    q2 = jax.random.normal(kq2, (M2, D2), jnp.float32)
    k2 = jax.random.normal(kk2, (N2, D2), jnp.float32)

    mod_f32 = CosSim(matmul_dtype=jnp.float32)
    out = jax.block_until_ready(mod_f32(q2, k2, flatten=False, method='origin'))
    ref = _ref_pairwise(q2, k2)
    assert out.shape == (M2, N2)
    assert jnp.allclose(out, ref, atol=1e-5, rtol=1e-5)

    # flatten path with MATCHING shapes (previous run failed here with mismatched rows),
    # 'exp' post-process.
    k3 = jax.random.normal(kk3, (M2, D2), jnp.float32)
    out = jax.block_until_ready(mod_f32(q2, k3, flatten=True, method='exp'))
    ref = jnp.exp(jnp.minimum(_ref_flatten(q2, k3), 70.0))
    assert out.shape == (M2,)
    assert jnp.allclose(out, ref, atol=1e-5, rtol=1e-5)

    print("KERNEL_OK")
</pallas_src>

<mosaic_0001>
module attributes {stable_mosaic.version = 11 : i64} {
  func.func @_project_normalize_kernel(%arg0: i32, %arg1: memref<16x32xf32, #tpu.memory_space<vmem>>, %arg2: memref<32x16xf32, #tpu.memory_space<vmem>>, %arg3: memref<16x16xf32, #tpu.memory_space<vmem>>) attributes {dimension_semantics = [#tpu.dimension_semantics<parallel>], iteration_bounds = array<i64: 1>, scalar_prefetch = 0 : i64, scratch_operands = 0 : i64, tpu.core_type = #tpu.core_type<tc>, window_params = [{transform_indices = @transform_0, window_bounds = array<i64: 16, 32>}, {pipeline_mode = #tpu.pipeline_mode<synchronous>, transform_indices = @transform_1, window_bounds = array<i64: 32, 16>}, {transform_indices = @transform_2, window_bounds = array<i64: 16, 16>}]} {
    %c0 = arith.constant 0 : index
    %c0_0 = arith.constant 0 : index
    %0 = vector.load %arg2[%c0, %c0_0] : memref<32x16xf32, #tpu.memory_space<vmem>>, vector<32x16xf32>
    %c0_1 = arith.constant 0 : index
    %c0_2 = arith.constant 0 : index
    %1 = vector.load %arg1[%c0_1, %c0_2] : memref<16x32xf32, #tpu.memory_space<vmem>>, vector<16x32xf32>
    %cst = arith.constant dense<0.000000e+00> : vector<16x16xf32>
    %2 = tpu.matmul %1, %0, %cst {dimension_numbers = #tpu.dot_dimension_numbers<[1], [0], [0], [1], [0, 0, 1, 1], [], []>} : vector<16x32xf32>, vector<32x16xf32>, vector<16x16xf32> -> vector<16x16xf32>
    %3 = arith.mulf %2, %2 : vector<16x16xf32>
    %cst_3 = arith.constant dense<0.000000e+00> : vector<16xf32>
    %4 = vector.multi_reduction <add>, %3, %cst_3 [1] : vector<16x16xf32> to vector<16xf32>
    %5 = vector.shape_cast %4 : vector<16xf32> to vector<16x1xf32>
    %cst_4 = arith.constant 1.000000e-16 : f32
    %6 = vector.broadcast %cst_4 : f32 to vector<16x1xf32>
    %7 = arith.maximumf %5, %6 : vector<16x1xf32>
    %8 = math.rsqrt %7 : vector<16x1xf32>
    %9 = vector.broadcast %8 : vector<16x1xf32> to vector<16x16xf32>
    %10 = arith.mulf %2, %9 : vector<16x16xf32>
    %c0_5 = arith.constant 0 : index
    %c0_6 = arith.constant 0 : index
    %11 = vector.load %arg3[%c0_5, %c0_6] : memref<16x16xf32, #tpu.memory_space<vmem>>, vector<16x16xf32>
    tpu.vector_store %arg3[%c0_5, %c0_6], %10 {strides = array<i32>} : memref<16x16xf32, #tpu.memory_space<vmem>>, vector<16x16xf32>,
    return
  }
  func.func @transform_0(%arg0: i32) -> (i32, i32) {
    %c0_i32 = arith.constant 0 : i32
    %c0_i32_0 = arith.constant 0 : i32
    return %arg0, %c0_i32 : i32, i32
  }
  func.func @transform_1(%arg0: i32) -> (i32, i32) {
    %c0_i32 = arith.constant 0 : i32
    %c0_i32_0 = arith.constant 0 : i32
    %c0_i32_1 = arith.constant 0 : i32
    return %c0_i32, %c0_i32_0 : i32, i32
  }
  func.func @transform_2(%arg0: i32) -> (i32, i32) {
    %c0_i32 = arith.constant 0 : i32
    %c0_i32_0 = arith.constant 0 : i32
    return %arg0, %c0_i32 : i32, i32
  }
}

</mosaic_0001>

<bundles_post_ra>
// kernel: tpu_custom_call.1
= control target key start
LH: loop header
LB: loop body
LE: loop exit
PB: predicated region body
PF: predicated region fallthrough
CT: control target
= control target key end

     0   :  { %vm18_vm0 = vcmask 261120   ;;  %s243_s0 = inlined_call_operand.vmem [shape: f32[16,32], index: 0, kind: input, shape index: {}]   ;;  %s244_s1 = inlined_call_operand.vmem [shape: f32[32,16], index: 1, kind: input, shape index: {}]   ;;  %s245_s2 = inlined_call_operand.hbm [shape: f32[16,16], index: 2, kind: output, shape index: {}]  }
   0x1   :  { %v12_v0 = vld [vmem:[%s244_s1] sm:$0xff]  ;;  %v13_v1 = vld [vmem:[%s244_s1 + $0x8] sm:$0xff]  ;;  %v14_v2 = vld [vmem:[%s244_s1 + $0x10] sm:$0xff] }
   0x2   :  { %v152_v3 = vpack.c.bf16 %v13_v1, %v12_v0  ;;  %v15_v4 = vld [vmem:[%s244_s1 + $0x18] sm:$0xff]  ;;  %v16_v5 = vld [vmem:[%s243_s0] sm:$0xff] }
   0x3   :  { %v156_v6 = vpack.c.bf16 %v15_v4, %v14_v2  ;;  %149 = vmatprep.mubr.msk.f32.mxu0 %vm18_vm0, %v16_v5 }
   0x4   :  { %7 = vsyncpa [#allocation3], 0  ;;  %153 = vmatprep.subr.bf16.mxu0 %v152_v3  ;;  %v17_v7 = vld [vmem:[%s243_s0 + $0x8] sm:$0xff]  ;;  %vm102_vm1 = vcmask 130048   ;;  %s191_s0 = smov [#allocation2]  }
   0x5   :  { %155 = vmatpush3.bf16.msra.mxu0 %v152_v3  ;;  %s122_s1 = sshll.u32 %s191_s0, 4  ;;  %s123_s1 = int_to_ptr.vmem [resolvable:$true] %s122_s1 }
   0x6   :  { %157 = vmatprep.subr.bf16.mxu0 %v156_v6  ;;  %s167_s21 = scalar_lea.vmem %s123_s1, 256  ;;  %p172_p1 = scmp.lt.s32.totalorder %s123_s1, %s123_s1 }
   0x7   :  { %p168_p0 = scmp.ne.s32.totalorder %s123_s1, %s167_s21  ;;  %p173_p2 = scmp.lt.s32.totalorder %s167_s21, %s167_s21 }
   0x9   :  { %159 = vmatpush3.bf16.msra.mxu0 %v156_v6  ;;  %p174_p3 = por %p173_p2, %p172_p1 }
   0xb   :  { %p175_p4 = pnand %p174_p3, %p168_p0 }
   0xc   :  { %150 = vmatmul.mubr.msk.f32.vlgmr.msra.gmra.mrb[0].mxu0 %vm18_vm0, %v17_v7 }
  0xdf   :  { %v151_v8 = vpop.f32.mrb[0].mxu0 }
  0xe0   :  { %v91_v9 = vpop.f32.mrb[1].mxu0  ;;  %v101_v11 = vmul.f32 %v151_v8, %v151_v8 }
  0xe1   :  { %v100_v10 = vmul.f32 %v91_v9, %v91_v9 }
  0xe2   :  { %v106_v13 = vsel %vm102_vm1, %v101_v11, 0.0 }
  0xe3   :  { %v103_v12 = vsel %vm102_vm1, %v100_v10, 0.0 }
  0xe4   :  { %104 = vadd.xlane.f32.xlu0 %v103_v12 }
  0xe8   :  { %107 = vadd.xlane.f32.xlu0 %v106_v13 }
 0x171   :  { %v105_v14 = vpop.xlane.xlu0 %104 }
 0x172   :  { %v109_v15 = vmax.f32 %v105_v14, 1e-16 }
 0x174   :  { %163 = vrsqrt.f32 %v109_v15 }
 0x175   :  { %v108_v16 = vpop.xlane.xlu0 %107 }
 0x176   :  { %v110_v17 = vmax.f32 %v108_v16, 1e-16 }
 0x178   :  { %165 = vrsqrt.f32 %v110_v17 }
 0x17e   :  { %v164_v18 = vpop.eup %163 }
 0x17f   :  { %v113_v19 = vmul.f32 %v164_v18, %v91_v9 }
 0x181   :  { %115 = vst.msk [vmem:[#allocation2] sm:$0xff] %vm102_vm1, %v113_v19 }
 0x182   :  { %v166_v20 = vpop.eup %165 }
 0x183   :  { %v114_v21 = vmul.f32 %v166_v20, %v151_v8 }
 0x185   :  { %116 = vst.msk [vmem:[#allocation2 + $0x8] sm:$0xff] %vm102_vm1, %v114_v21 }
 0x186   :  { %178 = shalt.err (!%p175_p4)
}
 0x187   :  { %s179_s24 = scalar_lea.hbm %s245_s2, 256 }
 0x188   :  { %p180_p5 = scmp.ne.s32.totalorder %s245_s2, %s179_s24  ;;  %p183_p6 = scmp.lt.u32.totalorder %s179_s24, %s245_s2 }
 0x18a   :  { %p185_p7 = pnand %p183_p6, %p180_p5 }
 0x18c   :  { %188 = shalt.err (!%p185_p7)
}
 0x18d   :  { %s192_s29 = smov 128   ;;  %s193_s30 = smov 8  }
 0x18e   :  { %128 = dma.vmem_to_hbm [thread:$0]  %s123_s1, 256, %s245_s2, [#allocation3], %s192_s29, %s192_s29, %s193_s30  }
 0x18f   :  { %189 = dma.done.wait [#allocation3], 256  }
 0x190   :  { %190 = vsyncadd [#allocation3], 4294967040 }
 0x191   :  { %132 = vsyncpa [#allocation3], 1 }

</bundles_post_ra>
